<compile_context>
chip_gen: v6e
topology: v6e:2x2x1
jax: 0.10.0
libtpu: 0.0.40
codegen_flags: <defaults>
</compile_context>

<pallas_src>
import functools
import math

import numpy as np
import jax
import jax.numpy as jnp
from jax.experimental import pallas as pl
from jax.experimental.pallas import tpu as pltpu

NUM_HEADS = 8
DEPTHS = [2, 3, 4, 3, 2]
WINDOW_SIZES = [4, 8, 8, 8, 4]


# ----------------------------------------------------------------------------
# small helpers
# ----------------------------------------------------------------------------
def _pick_tile(M, pref=256):
    """Largest row-tile that divides M (avoids per-call jnp.pad)."""
    for t in (pref, 128, 64, 32, 16, 8):
        if M % t == 0:
            return t
    return M


def _gelu(x):
    # tanh-approx GELU (exp/tanh go to the EUP slot, free under the MXU).
    c = math.sqrt(2.0 / math.pi)
    return 0.5 * x * (1.0 + jnp.tanh(c * (x + 0.044715 * x * x * x)))


# ----------------------------------------------------------------------------
# Pallas kernels
# ----------------------------------------------------------------------------
def _mm_kernel(*refs, act, has_res):
    """(tm,K)@(K,N) + bias [+ residual] with optional fused activation."""
    if has_res:
        a_ref, b_ref, bias_ref, r_ref, o_ref = refs
    else:
        a_ref, b_ref, bias_ref, o_ref = refs
        r_ref = None
    acc = jnp.dot(a_ref[...], b_ref[...], preferred_element_type=jnp.float32)
    acc = acc + bias_ref[...]
    if r_ref is not None:
        acc = acc + r_ref[...]
    if act == "relu":
        acc = jnp.maximum(acc, 0.0)
    elif act == "gelu":
        acc = _gelu(acc)
    o_ref[...] = acc.astype(o_ref.dtype)


@functools.partial(jax.jit, static_argnames=("act",))
def matmul2d(a, b, bias=None, residual=None, act="none"):
    """(M,K) @ (K,N) + bias[N] [+ residual] with fused act. bf16 MXU, f32 acc."""
    M, K = a.shape
    N = b.shape[1]
    if bias is None:
        bias = jnp.zeros((N,), jnp.float32)
    tm = _pick_tile(M)
    in_specs = [pl.BlockSpec((tm, K), lambda i: (i, 0)),
                pl.BlockSpec((K, N), lambda i: (0, 0)),
                pl.BlockSpec((1, N), lambda i: (0, 0))]
    operands = [a.astype(jnp.bfloat16), b.astype(jnp.bfloat16),
                bias.reshape(1, N).astype(jnp.float32)]
    if residual is not None:
        in_specs.append(pl.BlockSpec((tm, N), lambda i: (i, 0)))
        operands.append(residual.astype(jnp.float32))
    return pl.pallas_call(
        functools.partial(_mm_kernel, act=act, has_res=residual is not None),
        out_shape=jax.ShapeDtypeStruct((M, N), jnp.float32),
        grid=(M // tm,),
        in_specs=in_specs,
        out_specs=pl.BlockSpec((tm, N), lambda i: (i, 0)),
        compiler_params=pltpu.CompilerParams(dimension_semantics=("parallel",)),
    )(*operands)


def _add_ln_kernel(t_ref, p_ref, g_ref, b_ref, o_ref, *, eps):
    x = t_ref[0] + p_ref[...]
    mean = jnp.mean(x, axis=-1, keepdims=True)
    var = jnp.mean(jnp.square(x - mean), axis=-1, keepdims=True)
    y = (x - mean) * jax.lax.rsqrt(var + eps) * g_ref[...] + b_ref[...]
    o_ref[0] = y.astype(o_ref.dtype)


@functools.partial(jax.jit, static_argnames=("eps",))
def add_layernorm(tok, pos, g, b, eps=1e-12):
    """LN(tok + pos) ; pos (HW,C) is NOT replicated across batch (index_map)."""
    B, HW, C = tok.shape
    return pl.pallas_call(
        functools.partial(_add_ln_kernel, eps=eps),
        out_shape=jax.ShapeDtypeStruct((B, HW, C), jnp.float32),
        grid=(B,),
        in_specs=[pl.BlockSpec((1, HW, C), lambda i: (i, 0, 0)),
                  pl.BlockSpec((HW, C), lambda i: (0, 0)),
                  pl.BlockSpec((1, C), lambda i: (0, 0)),
                  pl.BlockSpec((1, C), lambda i: (0, 0))],
        out_specs=pl.BlockSpec((1, HW, C), lambda i: (i, 0, 0)),
        compiler_params=pltpu.CompilerParams(dimension_semantics=("parallel",)),
    )(tok.astype(jnp.float32), pos.astype(jnp.float32),
      g.reshape(1, C).astype(jnp.float32), b.reshape(1, C).astype(jnp.float32))


def _window_attn_kernel(x_ref, g1_ref, b1_ref, qkvw_ref, qkvb_ref,
                        projw_ref, projb_ref, bias_ref, o_ref,
                        *, num_heads, scale, eps):
    """All windows of one image: fused norm1 + QKV + softmax(+bias) + proj."""
    x = x_ref[0].astype(jnp.float32)                        # (nW, N, C)
    nW, N, C = x.shape
    hd = C // num_heads
    # fused LayerNorm (norm1)
    mean = jnp.mean(x, axis=-1, keepdims=True)
    var = jnp.mean(jnp.square(x - mean), axis=-1, keepdims=True)
    xn = (x - mean) * jax.lax.rsqrt(var + eps)
    xn = xn * g1_ref[...].reshape(1, 1, C) + b1_ref[...].reshape(1, 1, C)
    # QKV projection for all windows at once
    qkv = jnp.dot(xn.reshape(nW * N, C).astype(jnp.bfloat16), qkvw_ref[...],
                  preferred_element_type=jnp.float32) + qkvb_ref[...]
    qkv = qkv.reshape(nW, N, 3 * C)
    pw = projw_ref[...]                                     # (C, C) bf16
    acc = jnp.zeros((nW * N, C), jnp.float32)
    for h in range(num_heads):
        q = qkv[:, :, h * hd:(h + 1) * hd] * scale
        k = qkv[:, :, C + h * hd:C + (h + 1) * hd]
        v = qkv[:, :, 2 * C + h * hd:2 * C + (h + 1) * hd]
        s = jnp.einsum('wqd,wkd->wqk', q.astype(jnp.bfloat16),
                       k.astype(jnp.bfloat16),
                       preferred_element_type=jnp.float32)  # (nW, N, N)
        s = s + bias_ref[h]                                 # (nWb, N, N) broadcast
        s = s - jnp.max(s, axis=-1, keepdims=True)
        e = jnp.exp(s)
        p = e * pl.reciprocal(jnp.sum(e, axis=-1, keepdims=True), approx=True)
        oh = jnp.einsum('wqk,wkd->wqd', p.astype(jnp.bfloat16),
                        v.astype(jnp.bfloat16),
                        preferred_element_type=jnp.float32)  # (nW, N, hd)
        # per-head accumulation into the output projection (no concat)
        acc = acc + jnp.dot(oh.reshape(nW * N, hd).astype(jnp.bfloat16),
                            pw[h * hd:(h + 1) * hd, :],
                            preferred_element_type=jnp.float32)
    y = acc + projb_ref[...]
    o_ref[0] = y.reshape(nW, N, C).astype(o_ref.dtype)


@functools.partial(jax.jit, static_argnames=("num_heads", "scale", "eps"))
def window_attention(xw, g1, b1, qkv_w, qkv_b, proj_w, proj_b, attn_bias,
                     num_heads, scale, eps=1e-5):
    B, nW, N, C = xw.shape
    nh, nWb = attn_bias.shape[0], attn_bias.shape[1]
    return pl.pallas_call(
        functools.partial(_window_attn_kernel, num_heads=num_heads,
                          scale=scale, eps=eps),
        out_shape=jax.ShapeDtypeStruct((B, nW, N, C), jnp.float32),
        grid=(B,),
        in_specs=[
            pl.BlockSpec((1, nW, N, C), lambda b: (b, 0, 0, 0)),
            pl.BlockSpec((1, C), lambda b: (0, 0)),
            pl.BlockSpec((1, C), lambda b: (0, 0)),
            pl.BlockSpec((C, 3 * C), lambda b: (0, 0)),
            pl.BlockSpec((1, 3 * C), lambda b: (0, 0)),
            pl.BlockSpec((C, C), lambda b: (0, 0)),
            pl.BlockSpec((1, C), lambda b: (0, 0)),
            pl.BlockSpec((nh, nWb, N, N), lambda b: (0, 0, 0, 0)),   # never replicated
        ],
        out_specs=pl.BlockSpec((1, nW, N, C), lambda b: (b, 0, 0, 0)),
        compiler_params=pltpu.CompilerParams(dimension_semantics=("parallel",)),
    )(xw.astype(jnp.bfloat16),
      g1.reshape(1, C).astype(jnp.float32), b1.reshape(1, C).astype(jnp.float32),
      qkv_w, qkv_b.reshape(1, -1).astype(jnp.float32),
      proj_w, proj_b.reshape(1, -1).astype(jnp.float32),
      attn_bias.astype(jnp.float32))


def _add_ln_mlp_kernel(a_ref, b_ref, g_ref, beta_ref, w_ref, bias_ref,
                       x1_ref, h_ref, *, eps):
    """x1 = a + b ; h = GELU(LN(x1) @ W + bias). Two outputs (x1 f32, h bf16)."""
    x1 = a_ref[...] + b_ref[...]
    x1_ref[...] = x1.astype(x1_ref.dtype)
    mean = jnp.mean(x1, axis=-1, keepdims=True)
    var = jnp.mean(jnp.square(x1 - mean), axis=-1, keepdims=True)
    xn = (x1 - mean) * jax.lax.rsqrt(var + eps) * g_ref[...] + beta_ref[...]
    acc = jnp.dot(xn.astype(jnp.bfloat16), w_ref[...],
                  preferred_element_type=jnp.float32) + bias_ref[...]
    h_ref[...] = _gelu(acc).astype(h_ref.dtype)


@functools.partial(jax.jit, static_argnames=("eps",))
def add_ln_mlp(a, b, g, beta, w, bias, eps=1e-5):
    M, C = a.shape
    hidden = w.shape[1]
    tm = _pick_tile(M)
    return pl.pallas_call(
        functools.partial(_add_ln_mlp_kernel, eps=eps),
        out_shape=(jax.ShapeDtypeStruct((M, C), jnp.float32),
                   jax.ShapeDtypeStruct((M, hidden), jnp.bfloat16)),
        grid=(M // tm,),
        in_specs=[pl.BlockSpec((tm, C), lambda i: (i, 0)),
                  pl.BlockSpec((tm, C), lambda i: (i, 0)),
                  pl.BlockSpec((1, C), lambda i: (0, 0)),
                  pl.BlockSpec((1, C), lambda i: (0, 0)),
                  pl.BlockSpec((C, hidden), lambda i: (0, 0)),
                  pl.BlockSpec((1, hidden), lambda i: (0, 0))],
        out_specs=(pl.BlockSpec((tm, C), lambda i: (i, 0)),
                   pl.BlockSpec((tm, hidden), lambda i: (i, 0))),
        compiler_params=pltpu.CompilerParams(dimension_semantics=("parallel",)),
    )(a.astype(jnp.float32), b.astype(jnp.float32),
      g.reshape(1, C).astype(jnp.float32), beta.reshape(1, C).astype(jnp.float32),
      w, bias.reshape(1, hidden).astype(jnp.float32))


def _final_head_kernel(x_ref, w1_ref, b1_ref, g_ref, beta_ref, w2_ref, bias_ref,
                       o_ref, *, eps):
    """Linear + GELU + LayerNorm + logits matmul + positional bias, fused."""
    x = x_ref[0]                                            # (tm, dim) bf16
    h = jnp.dot(x, w1_ref[...], preferred_element_type=jnp.float32) + b1_ref[...]
    h = _gelu(h)
    mean = jnp.mean(h, axis=-1, keepdims=True)
    var = jnp.mean(jnp.square(h - mean), axis=-1, keepdims=True)
    fe = (h - mean) * jax.lax.rsqrt(var + eps) * g_ref[...] + beta_ref[...]
    logits = jnp.dot(fe.astype(jnp.bfloat16), w2_ref[...],
                     preferred_element_type=jnp.float32)
    o_ref[0] = (logits + bias_ref[...]).astype(o_ref.dtype)


@functools.partial(jax.jit, static_argnames=("B", "S", "label_nc", "eps"))
def final_head(rows, w1, b1, g, beta, w2_pad, bias_pad, B, S, label_nc, eps=1e-12):
    dim = rows.shape[1]
    Np = w2_pad.shape[1]                                    # label_nc padded to 128x
    HW = S * S
    tm = _pick_tile(HW)
    x3 = rows.astype(jnp.bfloat16).reshape(B, HW, dim)
    out = pl.pallas_call(
        functools.partial(_final_head_kernel, eps=eps),
        out_shape=jax.ShapeDtypeStruct((B, HW, Np), jnp.float32),
        grid=(B, HW // tm),
        in_specs=[
            pl.BlockSpec((1, tm, dim), lambda b, i: (b, i, 0)),
            pl.BlockSpec((dim, dim), lambda b, i: (0, 0)),
            pl.BlockSpec((1, dim), lambda b, i: (0, 0)),
            pl.BlockSpec((1, dim), lambda b, i: (0, 0)),
            pl.BlockSpec((1, dim), lambda b, i: (0, 0)),
            pl.BlockSpec((dim, Np), lambda b, i: (0, 0)),
            pl.BlockSpec((tm, Np), lambda b, i: (i, 0)),    # bias not replicated over B
        ],
        out_specs=pl.BlockSpec((1, tm, Np), lambda b, i: (b, i, 0)),
        compiler_params=pltpu.CompilerParams(
            dimension_semantics=("parallel", "parallel")),
    )(x3, w1, b1.reshape(1, dim).astype(jnp.float32),
      g.reshape(1, dim).astype(jnp.float32), beta.reshape(1, dim).astype(jnp.float32),
      w2_pad, bias_pad)
    return out.reshape(B, S, S, Np)[..., :label_nc]


# ----------------------------------------------------------------------------
# Conv-as-matmul glue (im2col in NCHW)
# ----------------------------------------------------------------------------
def _im2col(x, k, stride, pad):
    B, Cc, H, W = x.shape
    xp = jnp.pad(x, ((0, 0), (0, 0), (pad, pad), (pad, pad)))
    Ho = (H + 2 * pad - k) // stride + 1
    Wo = (W + 2 * pad - k) // stride + 1
    cols = []
    for i in range(k):
        for j in range(k):
            cols.append(xp[:, :, i:i + stride * Ho:stride, j:j + stride * Wo:stride])
    patches = jnp.stack(cols, axis=2).reshape(B, Cc * k * k, Ho, Wo)
    return patches, Ho, Wo


def conv2d_rows(x, w_mat, bias, k, stride, pad, act="none", residual_rows=None):
    """NCHW conv via im2col + Pallas matmul. Returns NHWC-flattened rows.
    Bias/ReLU/residual-add are fused into the matmul kernel; BN is pre-folded."""
    # TODO(synk): move the patch gather into the matmul kernel (grid axis over k*k
    # with Element/DMA index_map) to avoid the k^2-expanded im2col copy in HBM.
    B = x.shape[0]
    patches, Ho, Wo = _im2col(x, k, stride, pad)
    a = jnp.transpose(patches, (0, 2, 3, 1)).reshape(B * Ho * Wo, -1)
    y = matmul2d(a, w_mat, bias, residual=residual_rows, act=act)
    return y, Ho, Wo


def rows_to_nchw(rows, B, Ho, Wo):
    Cc = rows.shape[-1]
    return jnp.transpose(rows.reshape(B, Ho, Wo, Cc), (0, 3, 1, 2))


# ----------------------------------------------------------------------------
# Swin static helpers (numpy) and parameter init
# ----------------------------------------------------------------------------
def _relative_position_bias(table, ws, heads):
    coords = np.stack(np.meshgrid(np.arange(ws), np.arange(ws), indexing="ij"))
    cf = coords.reshape(2, -1)
    rel = (cf[:, :, None] - cf[:, None, :]).transpose(1, 2, 0).astype(np.int64)
    rel[:, :, 0] += ws - 1
    rel[:, :, 1] += ws - 1
    rel[:, :, 0] *= 2 * ws - 1
    idx = rel.sum(-1)
    N = ws * ws
    bias = table[idx.reshape(-1)].reshape(N, N, heads)
    return jnp.transpose(bias, (2, 0, 1))                   # (heads, N, N)


def _compute_attn_mask(H, W, ws, shift):
    img_mask = np.zeros((1, H, W, 1), np.float32)
    cnt = 0
    for h in (slice(0, -ws), slice(-ws, -shift), slice(-shift, None)):
        for w in (slice(0, -ws), slice(-ws, -shift), slice(-shift, None)):
            img_mask[:, h, w, :] = cnt
            cnt += 1
    mw = img_mask.reshape(1, H // ws, ws, W // ws, ws, 1)
    mw = mw.transpose(0, 1, 3, 2, 4, 5).reshape(-1, ws * ws)
    am = mw[:, None, :] - mw[:, :, None]
    am = np.where(am != 0, -100.0, 0.0).astype(np.float32)
    return jnp.asarray(am)                                  # (nW, N, N)


def _fold_conv(w, bias=None, bn=None):
    """Fold eval-mode BN into the conv, return bf16 matmul-layout weight + f32 bias."""
    Cout, Cin, kh, kw = w.shape
    w = w.astype(jnp.float32)
    b = jnp.zeros((Cout,), jnp.float32) if bias is None else bias.astype(jnp.float32)
    if bn is not None:
        g, beta, mean, var, eps = bn
        s = g / jnp.sqrt(var + eps)
        w = w * s[:, None, None, None]
        b = (b - mean) * s + beta
    wm = w.reshape(Cout, Cin * kh * kw).T.astype(jnp.bfloat16)
    return wm, b


def init_params(key, args, label_nc):
    dim = args["dim"]
    C = 8 * dim
    inter = args["inter_seg_size"]
    S = args["initial_seg_size"]
    Np = -(-label_nc // 128) * 128
    state = [key]

    def nk():
        state[0], sub = jax.random.split(state[0])
        return sub

    def tn(shape):                                          # ~trunc_normal(0, 0.02)
        return jax.random.normal(nk(), shape, jnp.float32) * 0.02

    p = {}
    p["seg2embed"] = tn((label_nc, dim))
    p["seg2embed_t_pad"] = jnp.pad(p["seg2embed"].T,
                                   ((0, 0), (0, Np - label_nc))).astype(jnp.bfloat16)
    p["pos_emb"] = tn((inter * inter, C))
    p["ln_g"], p["ln_b"] = jnp.ones((C,)), jnp.zeros((C,))
    for i, (cin, cout) in enumerate([(dim, 2 * dim), (2 * dim, 4 * dim),
                                     (4 * dim, 8 * dim)], start=1):
        wm, b = _fold_conv(tn((cout, cin, 4, 4)), bias=tn((cout,)))
        p[f"sconv{i}_wm"], p[f"sconv{i}_b"] = wm, b

    layers = []
    for depth, ws_cfg in zip(DEPTHS, WINDOW_SIZES):
        blocks = []
        for bi in range(depth):
            ws = ws_cfg
            shift = 0 if bi % 2 == 0 else ws_cfg // 2
            if inter <= ws:                                 # Swin window clamping
                shift = 0
                ws = inter
            hidden = int(C * 2.0)
            table = tn(((2 * ws - 1) ** 2, NUM_HEADS))
            rel = _relative_position_bias(table, ws, NUM_HEADS)      # (heads, N, N)
            if shift > 0:
                mask = _compute_attn_mask(inter, inter, ws, shift)   # (nW, N, N)
                attn_bias = rel[:, None] + mask[None]                # (heads, nW, N, N)
            else:
                attn_bias = rel[:, None]                             # (heads, 1, N, N)
            blocks.append(dict(
                window_size=ws, shift_size=shift,
                norm1_g=jnp.ones((C,)), norm1_b=jnp.zeros((C,)),
                qkv_wm=tn((3 * C, C)).T.astype(jnp.bfloat16), qkv_b=jnp.zeros((3 * C,)),
                proj_wm=tn((C, C)).T.astype(jnp.bfloat16), proj_b=jnp.zeros((C,)),
                norm2_g=jnp.ones((C,)), norm2_b=jnp.zeros((C,)),
                fc1_wm=tn((hidden, C)).T.astype(jnp.bfloat16), fc1_b=jnp.zeros((hidden,)),
                fc2_wm=tn((C, hidden)).T.astype(jnp.bfloat16), fc2_b=jnp.zeros((C,)),
                attn_bias=attn_bias.astype(jnp.float32),
            ))
        layers.append(blocks)
    p["swin_layers"] = layers

    p["ftp_lin_wm"] = tn((dim, dim)).T.astype(jnp.bfloat16)
    p["ftp_lin_b"] = jnp.zeros((dim,))
    p["ftp_ln_g"], p["ftp_ln_b"] = jnp.ones((dim,)), jnp.zeros((dim,))
    p["final_bias_pad"] = jnp.zeros((S * S, Np), jnp.float32)

    renderer = []
    num_blocks = int(math.log2(S // inter))
    for i in range(num_blocks):
        cin, cout = 2 ** (3 - i) * dim, 2 ** (2 - i) * dim
        bn1 = (jnp.ones((cout,)), jnp.zeros((cout,)), jnp.zeros((cout,)),
               jnp.ones((cout,)), 1e-5)
        bn2 = (jnp.ones((cout,)), jnp.zeros((cout,)), jnp.zeros((cout,)),
               jnp.ones((cout,)), 1e-5)
        c1_wm, c1_b = _fold_conv(tn((cout, cin, 3, 3)), bn=bn1)
        c2_wm, c2_b = _fold_conv(tn((cout, cout, 3, 3)), bn=bn2)
        sp_wm, sp_b = _fold_conv(tn((cout, cin, 3, 3)))
        renderer.append(dict(conv1_wm=c1_wm, conv1_b=c1_b,
                             conv2_wm=c2_wm, conv2_b=c2_b,
                             surplus_wm=sp_wm, surplus_b=sp_b))
    p["renderer"] = renderer
    return p


# ----------------------------------------------------------------------------
# Forward pass
# ----------------------------------------------------------------------------
def swin_block(x, blk, B, H, W):
    C = x.shape[-1]
    ws, shift = blk["window_size"], blk["shift_size"]
    N = ws * ws
    nW = (H // ws) * (W // ws)

    shortcut = x.reshape(B * H * W, C)
    xs = x.reshape(B, H, W, C)
    if shift > 0:
        xs = jnp.roll(xs, shift=(-shift, -shift), axis=(1, 2))
    xw = xs.reshape(B, H // ws, ws, W // ws, ws, C).transpose(0, 1, 3, 2, 4, 5)
    xw = xw.reshape(B, nW, N, C)

    scale = float((C // NUM_HEADS) ** -0.5)
    aw = window_attention(xw, blk["norm1_g"], blk["norm1_b"], blk["qkv_wm"],
                          blk["qkv_b"], blk["proj_wm"], blk["proj_b"],
                          blk["attn_bias"], num_heads=NUM_HEADS, scale=scale)

    y = aw.reshape(B, H // ws, W // ws, ws, ws, C).transpose(0, 1, 3, 2, 4, 5)
    y = y.reshape(B, H, W, C)
    if shift > 0:
        y = jnp.roll(y, shift=(shift, shift), axis=(1, 2))
    y = y.reshape(B * H * W, C)

    # fused: x1 = shortcut + attn ; h = GELU(norm2(x1) @ fc1 + b1)
    x1, h = add_ln_mlp(shortcut, y, blk["norm2_g"], blk["norm2_b"],
                       blk["fc1_wm"], blk["fc1_b"])
    # fused: out = x1 + h @ fc2 + b2
    out = matmul2d(h, blk["fc2_wm"], blk["fc2_b"], residual=x1)
    return out.reshape(B, H * W, C)


def swin_encode(x_labels, p, args):
    B = x_labels.shape[0]
    dim, inter = args["dim"], args["inter_seg_size"]
    C = 8 * dim
    emb = p["seg2embed"][x_labels]                          # (B, S, S, dim) gather (glue)
    z = jnp.transpose(emb, (0, 3, 1, 2))                    # NCHW
    r, Ho, Wo = conv2d_rows(z, p["sconv1_wm"], p["sconv1_b"], 4, 2, 1)
    z = rows_to_nchw(r, B, Ho, Wo)
    r, Ho, Wo = conv2d_rows(z, p["sconv2_wm"], p["sconv2_b"], 4, 2, 1)
    z = rows_to_nchw(r, B, Ho, Wo)
    r, Ho, Wo = conv2d_rows(z, p["sconv3_wm"], p["sconv3_b"], 4, 2, 1)
    tok = r.reshape(B, Ho * Wo, C)                          # 'B E H W -> B (H W) E'
    tok = add_layernorm(tok, p["pos_emb"], p["ln_g"], p["ln_b"], eps=1e-12)
    # Dropout(0.1) = identity in eval mode
    for layer in p["swin_layers"]:
        for blk in layer:
            tok = swin_block(tok, blk, B, inter, inter)
    return tok


def forward(x_labels, p, args, label_nc):
    B = x_labels.shape[0]
    dim, inter, S = args["dim"], args["inter_seg_size"], args["initial_seg_size"]
    # The reference forward runs the embed -> sconv -> swin path twice; keep both
    # calls (under jit the dead first pass is eliminated without changing output).
    embed = swin_encode(x_labels, p, args)
    embed = swin_encode(x_labels, p, args)

    rows = embed.reshape(B * inter * inter, 8 * dim)
    if p["renderer"]:
        z = rows_to_nchw(rows, B, inter, inter)
        n_blocks = len(p["renderer"])
        for bi, rb in enumerate(p["renderer"]):
            # TODO(synk): fold the nearest x2 upsample into the conv input gather
            # instead of materializing the repeated tensor in HBM.
            zu = jnp.repeat(jnp.repeat(z, 2, axis=2), 2, axis=3)
            res_rows, Ho, Wo = conv2d_rows(zu, rb["surplus_wm"], rb["surplus_b"], 3, 1, 1)
            h_rows, _, _ = conv2d_rows(zu, rb["conv1_wm"], rb["conv1_b"], 3, 1, 1,
                                       act="relu")
            h = rows_to_nchw(h_rows, B, Ho, Wo)
            rows, _, _ = conv2d_rows(h, rb["conv2_wm"], rb["conv2_b"], 3, 1, 1,
                                     act="relu", residual_rows=res_rows)
            if bi + 1 < n_blocks:
                z = rows_to_nchw(rows, B, Ho, Wo)

    # rows: (B*S*S, dim) NHWC-flat  ==  rearrange 'B E H W -> B H W E' flattened
    logits = final_head(rows, p["ftp_lin_wm"], p["ftp_lin_b"], p["ftp_ln_g"],
                        p["ftp_ln_b"], p["seg2embed_t_pad"], p["final_bias_pad"],
                        B=B, S=S, label_nc=label_nc)
    return logits


# ----------------------------------------------------------------------------
if __name__ == "__main__":
    args = {"dim": 4, "inter_seg_size": 8, "initial_seg_size": 64}
    label_nc = 200 + 2
    key = jax.random.PRNGKey(0)
    pkey, xkey = jax.random.split(key)
    params = init_params(pkey, args, label_nc)
    x = jax.random.randint(
        xkey, (2, args["initial_seg_size"], args["initial_seg_size"]),
        0, label_nc, dtype=jnp.int32)
    fwd = jax.jit(lambda labels: forward(labels, params, args, label_nc))
    out = jax.block_until_ready(fwd(x))
    assert out.shape == (2, args["initial_seg_size"], args["initial_seg_size"],
                         label_nc), out.shape
    assert bool(jnp.isfinite(out).all())
    print("KERNEL_OK")
</pallas_src>

<mosaic_0001>
module attributes {stable_mosaic.version = 11 : i64} {
  func.func @_mm_kernel(%arg0: i32, %arg1: memref<256x64xbf16, #tpu.memory_space<vmem>>, %arg2: memref<64x8xbf16, #tpu.memory_space<vmem>>, %arg3: memref<1x8xf32, #tpu.memory_space<vmem>>, %arg4: memref<256x8xf32, #tpu.memory_space<vmem>>) attributes {dimension_semantics = [#tpu.dimension_semantics<parallel>], iteration_bounds = array<i64: 8>, scalar_prefetch = 0 : i64, scratch_operands = 0 : i64, tpu.core_type = #tpu.core_type<tc>, window_params = [{transform_indices = @transform_0, window_bounds = array<i64: 256, 64>}, {pipeline_mode = #tpu.pipeline_mode<synchronous>, transform_indices = @transform_1, window_bounds = array<i64: 64, 8>}, {pipeline_mode = #tpu.pipeline_mode<synchronous>, transform_indices = @transform_2, window_bounds = array<i64: 1, 8>}, {transform_indices = @transform_3, window_bounds = array<i64: 256, 8>}]} {
    %c0 = arith.constant 0 : index
    %c0_0 = arith.constant 0 : index
    %0 = vector.load %arg1[%c0, %c0_0] : memref<256x64xbf16, #tpu.memory_space<vmem>>, vector<256x64xbf16>
    %c0_1 = arith.constant 0 : index
    %c0_2 = arith.constant 0 : index
    %1 = vector.load %arg2[%c0_1, %c0_2] : memref<64x8xbf16, #tpu.memory_space<vmem>>, vector<64x8xbf16>
    %cst = arith.constant dense<0.000000e+00> : vector<256x8xf32>
    %2 = tpu.matmul %0, %1, %cst {dimension_numbers = #tpu.dot_dimension_numbers<[1], [0], [0], [1], [0, 0, 1, 1], [], []>} : vector<256x64xbf16>, vector<64x8xbf16>, vector<256x8xf32> -> vector<256x8xf32>
    %c0_3 = arith.constant 0 : index
    %c0_4 = arith.constant 0 : index
    %3 = vector.load %arg3[%c0_3, %c0_4] : memref<1x8xf32, #tpu.memory_space<vmem>>, vector<1x8xf32>
    %4 = vector.broadcast %3 : vector<1x8xf32> to vector<256x8xf32>
    %5 = arith.addf %2, %4 : vector<256x8xf32>
    %c0_5 = arith.constant 0 : index
    %c0_6 = arith.constant 0 : index
    %6 = vector.load %arg4[%c0_5, %c0_6] : memref<256x8xf32, #tpu.memory_space<vmem>>, vector<256x8xf32>
    tpu.vector_store %arg4[%c0_5, %c0_6], %5 {strides = array<i32>} : memref<256x8xf32, #tpu.memory_space<vmem>>, vector<256x8xf32>,
    return
  }
  func.func @transform_0(%arg0: i32) -> (i32, i32) {
    %c0_i32 = arith.constant 0 : i32
    %c0_i32_0 = arith.constant 0 : i32
    return %arg0, %c0_i32 : i32, i32
  }
  func.func @transform_1(%arg0: i32) -> (i32, i32) {
    %c0_i32 = arith.constant 0 : i32
    %c0_i32_0 = arith.constant 0 : i32
    %c0_i32_1 = arith.constant 0 : i32
    return %c0_i32, %c0_i32_0 : i32, i32
  }
  func.func @transform_2(%arg0: i32) -> (i32, i32) {
    %c0_i32 = arith.constant 0 : i32
    %c0_i32_0 = arith.constant 0 : i32
    %c0_i32_1 = arith.constant 0 : i32
    return %c0_i32, %c0_i32_0 : i32, i32
  }
  func.func @transform_3(%arg0: i32) -> (i32, i32) {
    %c0_i32 = arith.constant 0 : i32
    %c0_i32_0 = arith.constant 0 : i32
    return %arg0, %c0_i32 : i32, i32
  }
}

</mosaic_0001>

<bundles_post_ra>
// kernel: matmul2d.1
= control target key start
LH: loop header
LB: loop body
LE: loop exit
PB: predicated region body
PF: predicated region fallthrough
CT: control target
= control target key end

     0   :  { %s797_s12 = smov 0   ;;  %s967_s0 = inlined_call_operand.vmem [shape: bf16[2048,64], index: 0, kind: input, shape index: {}]   ;;  %s968_s1 = inlined_call_operand.vmem [shape: bf16[64,8], index: 1, kind: input, shape index: {}]   ;;  %s969_s2 = inlined_call_operand.vmem [shape: f32[1,8], index: 2, kind: input, shape index: {}]   ;;  %s970_s3 = inlined_call_operand.vmem [shape: f32[2048,8], index: 3, kind: output, shape index: {}]  }
   0x1 LB: > { %s625_s13 = sadd.s32 4294967295, %s775_s12   ;;  %p629_p0 = scmp.ge.s32.totalorder %s775_s12, 1  ;;  %s775_s12 = sphi %s797_s12, %s13_s12  }
   0x2   : > { %p138_p1 = scmp.lt.s32.totalorder %s775_s12, 9 }
   0x4   : > { %p139_p2 = pnand %p629_p0, %p138_p1 }
   0x5   : > { %s630_s16 = sshll.u32 (!%p139_p2), %s625_s13, 5 }
   0x6   : > { %142 = sbr.rel (%p139_p2) target bundleno = 254 (0xfe), region = 32  ;;  %p163_p3 = scmp.lt.s32.totalorder (!%p139_p2), %s630_s16, 255 }
   0xb   : > { %v749_v0 = vld [vmem:[%s968_s1 + $0x18] sm:$0xff]   ;;  %v750_v1 = vld [vmem:[%s968_s1 + $0x10] sm:$0xff]   ;;  %s972_s16 = smov (!%p163_p3, %s630_s16), 255  ;;  %v751_v2 = vld [vmem:[%s968_s1 + $0x8] sm:$0xff]   ;;  %vm326_vm0 = vcmask 523264   ;;  %vm536_vm1 = vcmask 64512  }
   0xc   : > { %693 = vmatprep.subr.bf16.mxu0 %v749_v0  ;;  %733 = vmatprep.subr.bf16.mxu1 %v749_v0  ;;  %s631_s21 = sshll.u32 %s972_s16, 2  ;;  %v752_v3 = vld [vmem:[%s968_s1] sm:$0xff]   ;;  %s633_s27 = sshll.u32 %s972_s16, 3 }
   0xd   : > { %694 = vmatpush3.bf16.msra.mxu0 %v749_v0  ;;  %737 = vmatpush3.bf16.msra.mxu1 %v749_v0  ;;  %s823_s26 = scalar_lea.vmem %s967_s0, %s631_s21  ;;  %v861_v20 = vld [vmem:[%s969_s2] ss:$0 sm:$0xff]  ;;  %s866_s5 = scalar_lea.vmem %s970_s3, %s633_s27 }
   0xe   : > { %695 = vmatprep.subr.bf16.mxu0 %v750_v1  ;;  %734 = vmatprep.subr.bf16.mxu1 %v750_v1  ;;  %v753_v4 = vld [vmem:[%s823_s26] sm:$0xff]   ;;  %v755_v6 = vld [vmem:[%s823_s26 + $0x8] sm:$0xff]   ;;  %v757_v8 = vld [vmem:[%s823_s26 + $0x10] sm:$0xff]  }
   0xf   : > { %v754_v5 = vld [vmem:[%s823_s26 + $0x40] sm:$0xff]   ;;  %701 = vmatprep.mubr.msk.bf16.mxu0 %vm326_vm0, %v753_v4  ;;  %v756_v7 = vld [vmem:[%s823_s26 + $0x48] sm:$0xff]   ;;  %v758_v9 = vld [vmem:[%s823_s26 + $0x50] sm:$0xff]  }
  0x10   : > { %717 = vmatprep.mubr.msk.bf16.mxu1 %vm326_vm0, %v754_v5  ;;  %v759_v10 = vld [vmem:[%s823_s26 + $0x18] sm:$0xff]   ;;  %v761_v12 = vld [vmem:[%s823_s26 + $0x20] sm:$0xff]   ;;  %v763_v14 = vld [vmem:[%s823_s26 + $0x28] sm:$0xff]  }
  0x11   : > { %696 = vmatpush3.bf16.msra.mxu0 %v750_v1  ;;  %738 = vmatpush3.bf16.msra.mxu1 %v750_v1  ;;  %v760_v11 = vld [vmem:[%s823_s26 + $0x58] sm:$0xff]   ;;  %v762_v13 = vld [vmem:[%s823_s26 + $0x60] sm:$0xff]   ;;  %v764_v15 = vld [vmem:[%s823_s26 + $0x68] sm:$0xff]  }
  0x12   : > { %697 = vmatprep.subr.bf16.mxu0 %v751_v2  ;;  %735 = vmatprep.subr.bf16.mxu1 %v751_v2  ;;  %v765_v16 = vld [vmem:[%s823_s26 + $0x30] sm:$0xff]   ;;  %v767_v18 = vld [vmem:[%s823_s26 + $0x38] sm:$0xff]  }
  0x13   : > { %v766_v17 = vld [vmem:[%s823_s26 + $0x70] sm:$0xff]   ;;  %v768_v19 = vld [vmem:[%s823_s26 + $0x78] sm:$0xff]  }
  0x15   : > { %698 = vmatpush3.bf16.msra.mxu0 %v751_v2  ;;  %739 = vmatpush3.bf16.msra.mxu1 %v751_v2 }
  0x16   : > { %699 = vmatprep.subr.bf16.mxu0 %v752_v3  ;;  %736 = vmatprep.subr.bf16.mxu1 %v752_v3 }
  0x19   : > { %700 = vmatpush3.bf16.msra.mxu0 %v752_v3  ;;  %740 = vmatpush3.bf16.msra.mxu1 %v752_v3 }
  0x1c   : > { %702 = vmatmul.mubr.msk.bf16.vlgmr.msra.gmra.mxu0 %vm326_vm0, %v755_v6  ;;  %718 = vmatmul.mubr.msk.bf16.vlgmr.msra.gmra.mxu1 %vm326_vm0, %v756_v7 }
  0x1d   : > { %705 = vmatprep.mubr.msk.bf16.mxu0 %vm326_vm0, %v757_v8  ;;  %721 = vmatprep.mubr.msk.bf16.mxu1 %vm326_vm0, %v758_v9 }
  0x24   : > { %706 = vmatmul.mubr.msk.bf16.gmra.mxu0 %vm326_vm0, %v759_v10  ;;  %722 = vmatmul.mubr.msk.bf16.gmra.mxu1 %vm326_vm0, %v760_v11 }
  0x25   : > { %709 = vmatprep.mubr.msk.bf16.mxu0 %vm326_vm0, %v761_v12  ;;  %725 = vmatprep.mubr.msk.bf16.mxu1 %vm326_vm0, %v762_v13 }
  0x2c   : > { %710 = vmatmul.mubr.msk.bf16.gmra.mxu0 %vm326_vm0, %v763_v14  ;;  %726 = vmatmul.mubr.msk.bf16.gmra.mxu1 %vm326_vm0, %v764_v15 }
  0x2d   : > { %713 = vmatprep.mubr.msk.bf16.mxu0 %vm326_vm0, %v765_v16  ;;  %729 = vmatprep.mubr.msk.bf16.mxu1 %vm326_vm0, %v766_v17 }
  0x34   : > { %714 = vmatmul.mubr.msk.bf16.gmra.mxu0 %vm326_vm0, %v767_v18  ;;  %730 = vmatmul.mubr.msk.bf16.gmra.mxu1 %vm326_vm0, %v768_v19 }
  0xdc   : > { %v703_v21 = vpop.f32.mrf.mxu0  ;;  %v719_v22 = vpop.f32.mrf.mxu1 }
  0xdd   : > { %v418_v23 = vadd.f32 %v703_v21, %v861_v20  ;;  %v482_v24 = vadd.f32 %v719_v22, %v861_v20 }
  0xde   : > { %v409_v25 = vpop.f32.mrf.mxu0  ;;  %v473_v26 = vpop.f32.mrf.mxu1 }
  0xdf   : > { %539 = vst.msk [vmem:[%s866_s5 + $0x10] sm:$0xff] %vm536_vm1, %v418_v23  ;;  %555 = vst.msk [vmem:[%s866_s5 + $0x90] sm:$0xff] %vm536_vm1, %v482_v24  ;;  %v410_v27 = vadd.f32 %v861_v20, %v409_v25  ;;  %v474_v28 = vadd.f32 %v861_v20, %v473_v26 }
  0xe0   : > { %v704_v29 = vpop.f32.mrf.mxu0  ;;  %v720_v30 = vpop.f32.mrf.mxu1 }
  0xe1   : > { %537 = vst.msk [vmem:[%s866_s5] sm:$0xff] %vm536_vm1, %v410_v27  ;;  %553 = vst.msk [vmem:[%s866_s5 + $0x80] sm:$0xff] %vm536_vm1, %v474_v28  ;;  %v421_v31 = vadd.f32 %v704_v29, %v861_v20  ;;  %v485_v32 = vadd.f32 %v720_v30, %v861_v20 }
  0xe2   : > { %v412_v33 = vpop.f32.mrf.mxu0  ;;  %v476_v34 = vpop.f32.mrf.mxu1 }
  0xe3   : > { %540 = vst.msk [vmem:[%s866_s5 + $0x18] sm:$0xff] %vm536_vm1, %v421_v31  ;;  %556 = vst.msk [vmem:[%s866_s5 + $0x98] sm:$0xff] %vm536_vm1, %v485_v32  ;;  %v413_v35 = vadd.f32 %v861_v20, %v412_v33  ;;  %v477_v36 = vadd.f32 %v861_v20, %v476_v34 }
  0xe4   : > { %v707_v37 = vpop.f32.mrf.mxu0  ;;  %v723_v38 = vpop.f32.mrf.mxu1 }
  0xe5   : > { %538 = vst.msk [vmem:[%s866_s5 + $0x8] sm:$0xff] %vm536_vm1, %v413_v35  ;;  %554 = vst.msk [vmem:[%s866_s5 + $0x88] sm:$0xff] %vm536_vm1, %v477_v36  ;;  %v434_v39 = vadd.f32 %v707_v37, %v861_v20  ;;  %v498_v40 = vadd.f32 %v723_v38, %v861_v20 }
  0xe6   : > { %v425_v41 = vpop.f32.mrf.mxu0  ;;  %v489_v42 = vpop.f32.mrf.mxu1 }
  0xe7   : > { %543 = vst.msk [vmem:[%s866_s5 + $0x30] sm:$0xff] %vm536_vm1, %v434_v39  ;;  %559 = vst.msk [vmem:[%s866_s5 + $0xb0] sm:$0xff] %vm536_vm1, %v498_v40  ;;  %v426_v43 = vadd.f32 %v861_v20, %v425_v41  ;;  %v490_v44 = vadd.f32 %v861_v20, %v489_v42 }
  0xe8   : > { %v708_v45 = vpop.f32.mrf.mxu0  ;;  %v724_v46 = vpop.f32.mrf.mxu1 }
  0xe9   : > { %541 = vst.msk [vmem:[%s866_s5 + $0x20] sm:$0xff] %vm536_vm1, %v426_v43  ;;  %557 = vst.msk [vmem:[%s866_s5 + $0xa0] sm:$0xff] %vm536_vm1, %v490_v44  ;;  %v437_v47 = vadd.f32 %v708_v45, %v861_v20  ;;  %v501_v48 = vadd.f32 %v724_v46, %v861_v20 }
  0xea   : > { %v428_v49 = vpop.f32.mrf.mxu0  ;;  %v492_v50 = vpop.f32.mrf.mxu1 }
  0xeb   : > { %544 = vst.msk [vmem:[%s866_s5 + $0x38] sm:$0xff] %vm536_vm1, %v437_v47  ;;  %560 = vst.msk [vmem:[%s866_s5 + $0xb8] sm:$0xff] %vm536_vm1, %v501_v48  ;;  %v429_v51 = vadd.f32 %v861_v20, %v428_v49  ;;  %v493_v52 = vadd.f32 %v861_v20, %v492_v50 }
  0xec   : > { %v711_v53 = vpop.f32.mrf.mxu0  ;;  %v727_v54 = vpop.f32.mrf.mxu1 }
  0xed   : > { %542 = vst.msk [vmem:[%s866_s5 + $0x28] sm:$0xff] %vm536_vm1, %v429_v51  ;;  %558 = vst.msk [vmem:[%s866_s5 + $0xa8] sm:$0xff] %vm536_vm1, %v493_v52  ;;  %v450_v55 = vadd.f32 %v711_v53, %v861_v20  ;;  %v514_v56 = vadd.f32 %v727_v54, %v861_v20 }
  0xee   : > { %v441_v57 = vpop.f32.mrf.mxu0  ;;  %v505_v58 = vpop.f32.mrf.mxu1 }
  0xef   : > { %547 = vst.msk [vmem:[%s866_s5 + $0x50] sm:$0xff] %vm536_vm1, %v450_v55  ;;  %563 = vst.msk [vmem:[%s866_s5 + $0xd0] sm:$0xff] %vm536_vm1, %v514_v56  ;;  %v442_v59 = vadd.f32 %v861_v20, %v441_v57  ;;  %v506_v60 = vadd.f32 %v861_v20, %v505_v58 }
  0xf0   : > { %v712_v61 = vpop.f32.mrf.mxu0  ;;  %v728_v62 = vpop.f32.mrf.mxu1 }
  0xf1   : > { %545 = vst.msk [vmem:[%s866_s5 + $0x40] sm:$0xff] %vm536_vm1, %v442_v59  ;;  %561 = vst.msk [vmem:[%s866_s5 + $0xc0] sm:$0xff] %vm536_vm1, %v506_v60  ;;  %v453_v63 = vadd.f32 %v712_v61, %v861_v20  ;;  %v517_v0 = vadd.f32 %v728_v62, %v861_v20 }
  0xf2   : > { %v444_v1 = vpop.f32.mrf.mxu0  ;;  %v508_v2 = vpop.f32.mrf.mxu1 }
  0xf3   : > { %548 = vst.msk [vmem:[%s866_s5 + $0x58] sm:$0xff] %vm536_vm1, %v453_v63  ;;  %564 = vst.msk [vmem:[%s866_s5 + $0xd8] sm:$0xff] %vm536_vm1, %v517_v0  ;;  %v445_v3 = vadd.f32 %v861_v20, %v444_v1  ;;  %v509_v4 = vadd.f32 %v861_v20, %v508_v2 }
  0xf4   : > { %v715_v5 = vpop.f32.mrf.mxu0  ;;  %v731_v6 = vpop.f32.mrf.mxu1 }
  0xf5   : > { %546 = vst.msk [vmem:[%s866_s5 + $0x48] sm:$0xff] %vm536_vm1, %v445_v3  ;;  %562 = vst.msk [vmem:[%s866_s5 + $0xc8] sm:$0xff] %vm536_vm1, %v509_v4  ;;  %v466_v7 = vadd.f32 %v715_v5, %v861_v20  ;;  %v530_v8 = vadd.f32 %v731_v6, %v861_v20 }
  0xf6   : > { %v457_v9 = vpop.f32.mrf.mxu0  ;;  %v521_v10 = vpop.f32.mrf.mxu1 }
  0xf7   : > { %551 = vst.msk [vmem:[%s866_s5 + $0x70] sm:$0xff] %vm536_vm1, %v466_v7  ;;  %567 = vst.msk [vmem:[%s866_s5 + $0xf0] sm:$0xff] %vm536_vm1, %v530_v8  ;;  %v458_v11 = vadd.f32 %v861_v20, %v457_v9  ;;  %v522_v12 = vadd.f32 %v861_v20, %v521_v10 }
  0xf8   : > { %v716_v13 = vpop.f32.mrf.mxu0  ;;  %v732_v14 = vpop.f32.mrf.mxu1 }
  0xf9   : > { %549 = vst.msk [vmem:[%s866_s5 + $0x60] sm:$0xff] %vm536_vm1, %v458_v11  ;;  %565 = vst.msk [vmem:[%s866_s5 + $0xe0] sm:$0xff] %vm536_vm1, %v522_v12  ;;  %v469_v15 = vadd.f32 %v716_v13, %v861_v20  ;;  %v533_v16 = vadd.f32 %v732_v14, %v861_v20 }
  0xfa   : > { %v460_v17 = vpop.f32.mrf.mxu0  ;;  %v524_v18 = vpop.f32.mrf.mxu1 }
  0xfb   : > { %552 = vst.msk [vmem:[%s866_s5 + $0x78] sm:$0xff] %vm536_vm1, %v469_v15  ;;  %568 = vst.msk [vmem:[%s866_s5 + $0xf8] sm:$0xff] %vm536_vm1, %v533_v16  ;;  %v461_v19 = vadd.f32 %v861_v20, %v460_v17  ;;  %v525_v21 = vadd.f32 %v861_v20, %v524_v18 }
  0xfd   : > { %550 = vst.msk [vmem:[%s866_s5 + $0x68] sm:$0xff] %vm536_vm1, %v461_v19  ;;  %566 = vst.msk [vmem:[%s866_s5 + $0xe8] sm:$0xff] %vm536_vm1, %v525_v21 }
  0xfe PF: > { %s13_s12 = sadd.s32 1, %s775_s12  }
  0xff   : > { %p10_p4 = scmp.ge.s32.totalorder %s13_s12, 10  }
 0x101   :  { %12 = sbr.rel (!%p10_p4) target bundleno = 1 (0x1), region = 62 }

</bundles_post_ra>
